<compile_context>
chip_gen: v6e
topology: v6e:2x2x1
jax: 0.10.0
libtpu: 0.0.40
codegen_flags: <defaults>
</compile_context>

<pallas_src>
import functools

import jax
import jax.numpy as jnp
from jax.experimental import pallas as pl
from jax.experimental.pallas import tpu as pltpu

_LANE = 128


def _item_profile_kernel(ratings_t_ref, weights_t_ref, out_ref,
                         *, min_rating, max_rating):
    # ratings_t_ref: [n_aspects, TB]  gathered item rows, aspects on sublanes
    # weights_t_ref: [n_aspects, TB]  matching A_weights slab (transposed)
    # out_ref:       [1, TB]          lane-dense predictions for this batch tile
    ratings = jnp.clip(ratings_t_ref[...].astype(jnp.float32),
                       min_rating, max_rating)                      # clamp()
    weights = weights_t_ref[...].astype(jnp.float32)
    pred = jnp.sum(weights * ratings, axis=0, keepdims=True)        # f32 accumulate
    out_ref[...] = pred.astype(out_ref.dtype)


def learnable_item_profile_forward(items_parameters, I_ids, A_weights,
                                   *, aspect_min_rating, aspect_max_rating):
    """Pallas equivalent of LearnableItemProfile.forward."""
    n_rows, n_aspects = items_parameters.shape      # n_rows = n_items + 1
    B = I_ids.shape[0]
    assert A_weights.shape == (B, n_aspects)

    def _round_up(x, m):
        return ((x + m - 1) // m) * m

    # Batch tile: lane-dense, between 128 and 512 lanes per grid step.
    tb = min(512, _round_up(B, _LANE))
    b_pad = _round_up(B, tb)
    pad = b_pad - B

    # Bounds-safe ids (padding rows use id 0, weight 0 -> contribute nothing).
    ids = jnp.clip(I_ids.astype(jnp.int32), 0, n_rows - 1)
    weights = A_weights
    if pad:
        ids = jnp.pad(ids, (0, pad))
        weights = jnp.pad(weights, ((0, pad), (0, 0)))

    # Coalesced gather in the wrapper (single XLA gather), then transpose so that
    # aspects sit on the sublane axis and batch on the 128-lane axis.
    ratings_t = jnp.take(items_parameters, ids, axis=0).T           # [n_aspects, b_pad]
    weights_t = weights.T                                           # [n_aspects, b_pad]

    kernel = functools.partial(
        _item_profile_kernel,
        min_rating=float(aspect_min_rating),
        max_rating=float(aspect_max_rating),
    )

    out = pl.pallas_call(
        kernel,
        out_shape=jax.ShapeDtypeStruct((1, b_pad), A_weights.dtype),
        grid=(b_pad // tb,),
        in_specs=[
            pl.BlockSpec((n_aspects, tb), lambda i: (0, i)),        # ratings slab
            pl.BlockSpec((n_aspects, tb), lambda i: (0, i)),        # weights slab
        ],
        out_specs=pl.BlockSpec((1, tb), lambda i: (0, i)),          # lane-dense out
        compiler_params=pltpu.CompilerParams(
            dimension_semantics=("parallel",)),                     # megacore on v7x
    )(ratings_t, weights_t)

    return out[0, :B]


def _reference_forward(items_parameters, I_ids, A_weights,
                       *, aspect_min_rating, aspect_max_rating):
    ratings = jnp.clip(items_parameters[I_ids], aspect_min_rating, aspect_max_rating)
    return jnp.sum(A_weights * ratings, axis=1)


if __name__ == "__main__":
    # Synthetic "args": 5 aspects, rating range [1, 5].
    n_items = 32
    n_aspects = 5
    aspect_min_rating = 1.0
    aspect_max_rating = 5.0
    B = 8

    key = jax.random.PRNGKey(0)
    k_param, k_ids, k_w = jax.random.split(key, 3)

    # Module __init__ fills the parameter with the mid rating; add a deterministic
    # perturbation so the clamp path is actually exercised.
    mid = (aspect_min_rating + aspect_max_rating) / 2.0
    items_parameters = jnp.full((n_items + 1, n_aspects), mid, dtype=jnp.float32)
    items_parameters = items_parameters + 3.0 * jax.random.normal(
        k_param, (n_items + 1, n_aspects), dtype=jnp.float32)

    I_ids = jax.random.randint(k_ids, (B,), 0, n_items + 1, dtype=jnp.int32)
    A_weights = jax.random.uniform(k_w, (B, n_aspects), dtype=jnp.float32)

    preds = learnable_item_profile_forward(
        items_parameters, I_ids, A_weights,
        aspect_min_rating=aspect_min_rating,
        aspect_max_rating=aspect_max_rating,
    )
    preds = jax.block_until_ready(preds)

    expected = _reference_forward(
        items_parameters, I_ids, A_weights,
        aspect_min_rating=aspect_min_rating,
        aspect_max_rating=aspect_max_rating,
    )

    assert preds.shape == (B,)
    assert jnp.allclose(preds, expected, atol=1e-5, rtol=1e-5), (preds, expected)
    print("KERNEL_OK")
</pallas_src>

<mosaic_0001>
module attributes {stable_mosaic.version = 11 : i64} {
  func.func @_item_profile_kernel(%arg0: i32, %arg1: memref<5x128xf32, #tpu.memory_space<vmem>>, %arg2: memref<5x128xf32, #tpu.memory_space<vmem>>, %arg3: memref<1x128xf32, #tpu.memory_space<vmem>>) attributes {dimension_semantics = [#tpu.dimension_semantics<parallel>], iteration_bounds = array<i64: 1>, scalar_prefetch = 0 : i64, scratch_operands = 0 : i64, tpu.core_type = #tpu.core_type<tc>, window_params = [{transform_indices = @transform_0, window_bounds = array<i64: 5, 128>}, {transform_indices = @transform_1, window_bounds = array<i64: 5, 128>}, {transform_indices = @transform_2, window_bounds = array<i64: 1, 128>}]} {
    %c0 = arith.constant 0 : index
    %c0_0 = arith.constant 0 : index
    %0 = vector.load %arg1[%c0, %c0_0] : memref<5x128xf32, #tpu.memory_space<vmem>>, vector<5x128xf32>
    %cst = arith.constant 1.000000e+00 : f32
    %cst_1 = arith.constant 5.000000e+00 : f32
    %1 = vector.broadcast %cst : f32 to vector<5x128xf32>
    %2 = arith.maximumf %1, %0 : vector<5x128xf32>
    %3 = vector.broadcast %cst_1 : f32 to vector<5x128xf32>
    %4 = arith.minimumf %3, %2 : vector<5x128xf32>
    %c0_2 = arith.constant 0 : index
    %c0_3 = arith.constant 0 : index
    %5 = vector.load %arg2[%c0_2, %c0_3] : memref<5x128xf32, #tpu.memory_space<vmem>>, vector<5x128xf32>
    %6 = arith.mulf %5, %4 : vector<5x128xf32>
    %cst_4 = arith.constant dense<0.000000e+00> : vector<128xf32>
    %7 = vector.multi_reduction <add>, %6, %cst_4 [0] : vector<5x128xf32> to vector<128xf32>
    %8 = vector.shape_cast %7 : vector<128xf32> to vector<1x128xf32>
    %c0_5 = arith.constant 0 : index
    %c0_6 = arith.constant 0 : index
    %9 = vector.load %arg3[%c0_5, %c0_6] : memref<1x128xf32, #tpu.memory_space<vmem>>, vector<1x128xf32>
    tpu.vector_store %arg3[%c0_5, %c0_6], %8 {strides = array<i32>} : memref<1x128xf32, #tpu.memory_space<vmem>>, vector<1x128xf32>,
    return
  }
  func.func @transform_0(%arg0: i32) -> (i32, i32) {
    %c0_i32 = arith.constant 0 : i32
    %c0_i32_0 = arith.constant 0 : i32
    return %c0_i32, %arg0 : i32, i32
  }
  func.func @transform_1(%arg0: i32) -> (i32, i32) {
    %c0_i32 = arith.constant 0 : i32
    %c0_i32_0 = arith.constant 0 : i32
    return %c0_i32, %arg0 : i32, i32
  }
  func.func @transform_2(%arg0: i32) -> (i32, i32) {
    %c0_i32 = arith.constant 0 : i32
    %c0_i32_0 = arith.constant 0 : i32
    return %c0_i32, %arg0 : i32, i32
  }
}

</mosaic_0001>

<bundles_post_ra>
// kernel: tpu_custom_call.1
= control target key start
LH: loop header
LB: loop body
LE: loop exit
PB: predicated region body
PF: predicated region fallthrough
CT: control target
= control target key end

     0   :  { %7 = vsyncpa [#allocation3], 0  ;;  %s162_s0 = inlined_call_operand.hbm [shape: f32[5,128], index: 0, kind: input, shape index: {}]   ;;  %s163_s1 = inlined_call_operand.hbm [shape: f32[5,128], index: 1, kind: input, shape index: {}]   ;;  %s164_s2 = inlined_call_operand.hbm [shape: f32[1,128], index: 2, kind: output, shape index: {}]  }
   0x1   :  { %8 = vsyncpa [#allocation6], 0 }
   0x2   :  { %9 = vsyncpa [#allocation4], 0  ;;  %s135_s9 = smov [#allocation2]   ;;  %s136_s11 = smov [#allocation5]  }
   0x3   :  { %s16_s10 = sshll.u32 %s135_s9, 4  ;;  %s26_s12 = sshll.u32 %s136_s11, 4  ;;  %s17_s10 = int_to_ptr.vmem [resolvable:$true] %s16_s10  ;;  %s27_s12 = int_to_ptr.vmem [resolvable:$true] %s26_s12 }
   0x4   :  { %s77_s13 = scalar_lea.vmem %s17_s10, 128  ;;  %p82_p1 = scmp.lt.s32.totalorder %s17_s10, %s17_s10 }
   0x5   :  { %p78_p0 = scmp.ne.s32.totalorder %s17_s10, %s77_s13  ;;  %p83_p2 = scmp.lt.s32.totalorder %s77_s13, %s77_s13 }
   0x7   :  { %p84_p3 = por %p83_p2, %p82_p1 }
   0x9   :  { %p85_p4 = pnand %p84_p3, %p78_p0 }
   0xb   :  { %88 = shalt.err (!%p85_p4)
}
   0xc   :  { %19 = dma.hbm_to_vmem [thread:$0]  %s162_s0, 128, %s17_s10, [#allocation3]  }
   0xd   :  { %s97_s16 = scalar_lea.vmem %s27_s12, 128  ;;  %p102_p6 = scmp.lt.s32.totalorder %s27_s12, %s27_s12 }
   0xe   :  { %p98_p5 = scmp.ne.s32.totalorder %s27_s12, %s97_s16  ;;  %p103_p7 = scmp.lt.s32.totalorder %s97_s16, %s97_s16 }
  0x10   :  { %p104_p8 = por %p103_p7, %p102_p6 }
  0x12   :  { %p105_p9 = pnand %p104_p8, %p98_p5 }
  0x14   :  { %108 = shalt.err (!%p105_p9)
}
  0x15   :  { %29 = dma.hbm_to_vmem [thread:$0]  %s163_s1, 128, %s27_s12, [#allocation6]  }
  0x16   :  { %129 = dma.done.wait [#allocation3], 128  }
  0x17   :  { %130 = vsyncadd [#allocation3], 4294967168 }
  0x18   :  { %131 = dma.done.wait [#allocation6], 128  }
  0x19   :  { %132 = vsyncadd [#allocation6], 4294967168  ;;  %v36_v0 = vld [vmem:[#allocation2] sm:$0x1f]  ;;  %v39_v2 = vld [vmem:[#allocation5] sm:$0x1f] }
  0x1a   :  { %v37_v1 = vmax.f32 %v36_v0, 1.0  ;;  %vm41_vm0 = vcmask 1044480   ;;  %s137_s0 = smov [#allocation7]  }
  0x1b   :  { %s56_s19 = sshll.u32 %s137_s0, 4  ;;  %s57_s19 = int_to_ptr.vmem [resolvable:$true] %s56_s19 }
  0x1c   :  { %v38_v3 = vmin.f32 %v37_v1, 5.0  ;;  %s109_s1 = scalar_lea.vmem %s57_s19, 16  ;;  %s113_s20 = scalar_lea.vmem %s57_s19, 32 }
  0x1d   :  { %p110_p10 = scmp.ne.s32.totalorder %s57_s19, %s109_s1  ;;  %p114_p11 = scmp.lt.s32.totalorder %s57_s19, %s57_s19 }
  0x1e   :  { %v40_v4 = vmul.f32 %v39_v2, %v38_v3  ;;  %p115_p12 = scmp.lt.s32.totalorder %s113_s20, %s109_s1 }
  0x20   :  { %v42_v5 = vsel %vm41_vm0, %v40_v4, 0.0  ;;  %p116_p13 = por %p115_p12, %p114_p11 }
  0x21   :  { %v43_v6 = vrot.slane %v42_v5, 4 }
  0x22   :  { %p117_p0 = pnand %p116_p13, %p110_p10 }
  0x23   :  { %v44_v7 = vadd.f32 %v43_v6, %v42_v5 }
  0x25   :  { %v45_v8 = vrot.slane %v44_v7, 2 }
  0x27   :  { %v46_v9 = vadd.f32 %v45_v8, %v44_v7 }
  0x29   :  { %v47_v10 = vrot.slane %v46_v9, 1 }
  0x2b   :  { %v48_v11 = vadd.f32 %v47_v10, %v46_v9 }
  0x2d   :  { %49 = vst [vmem:[#allocation7] sm:$0x1] %v48_v11 }
  0x2e   :  { %120 = shalt.err (!%p117_p0)
}
  0x2f   :  { %59 = dma.vmem_to_hbm [thread:$0]  %s57_s19, 16, %s164_s2, [#allocation4]  }
  0x30   :  { %133 = dma.done.wait [#allocation4], 16  }
  0x31   :  { %134 = vsyncadd [#allocation4], 4294967280 }
  0x32   :  { %63 = vsyncpa [#allocation3], 1 }
  0x33   :  { %64 = vsyncpa [#allocation6], 1 }
  0x34   :  { %65 = vsyncpa [#allocation4], 1 }

</bundles_post_ra>
